<compile_context>
chip_gen: v6e
topology: v6e:2x2x1
jax: 0.10.0
libtpu: 0.0.40
codegen_flags: <defaults>
</compile_context>

<pallas_src>
import math

import numpy as np
import jax
import jax.numpy as jnp
from jax.experimental import pallas as pl
from jax.experimental.pallas import tpu as pltpu


def vec_to_inds(x_dim, vec_dim):
    """Indices of scale_tril coeffs, main diagonal filled first (matches PyTorch ref)."""
    ldiag, d, c = (x_dim, 0, 0)
    inds = [[], []]
    for _ in range(vec_dim - x_dim):
        inds[0].append(c + d)
        inds[1].append(c)
        if c == ldiag - 1:
            ldiag += -1
            c = 0
            d += 1
        else:
            c += 1
    return inds


def _broadcast_tril_kernel(const_ref, out_ref):
    # Pure broadcast-write: one constant lane-dense row replicated across the block's
    # sublane (batch-row) axis.  No MXU, no EUP, no masked stores in the hot path.
    out_ref[...] = jnp.broadcast_to(const_ref[...], out_ref.shape)


def _tpu_vmem_capacity_bytes():
    try:
        info = pltpu.get_tpu_info()
        cap = getattr(info, "vmem_capacity_bytes", None)
        if cap:
            return int(cap)
    except Exception:
        pass
    return 128 << 20  # v5e/v6e default; v7x reports 64 MiB via get_tpu_info


def _choose_batch_tile(n_rows, row_bytes, target_bytes):
    """Pick a batch tile of ~target_bytes satisfying the (8,128) block rules."""
    tb = max(1, target_bytes // row_bytes)
    if tb >= n_rows:
        tb = n_rows
        # v7x has 2 TensorCores: keep >= 2 grid blocks when legally possible so both
        # get work (no-op cost on single-TC v5e/v6e).
        if n_rows >= 16:
            tb = max(8, ((n_rows // 2) // 8) * 8)
    else:
        tb = max(8, (tb // 8) * 8) if n_rows >= 8 else n_rows
    tb = min(tb, n_rows)
    # Prefer a tile that divides n_rows (no masked tail block) without shrinking
    # below half the target tile.
    if 8 <= tb < n_rows and tb % 8 == 0 and n_rows % tb != 0:
        for d in range(tb, max(7, tb // 2 - 1), -8):
            if n_rows % d == 0:
                tb = d
                break
    return tb


def id_mu_cst_lambda_forward(x, scale_vec, x_dim, vec_dim, *, min_pallas_bytes=1 << 20):
    """Returns (loc, scale_tril) defining Gaussian(loc=x, scale_tril=const)."""
    B, D = x.shape
    assert D == x_dim
    L = vec_dim - x_dim
    assert scale_vec.shape == (L,)

    sv = scale_vec.astype(jnp.float32)

    # ---- Constant, batch-independent scale_tril: computed once in the wrapper.
    if vec_dim == x_dim + 1:
        # Isotropic branch: scale_tril = exp(s) * I.
        tril_const = jnp.exp(sv[0]) * jnp.eye(D, dtype=jnp.float32)
    else:
        inds = vec_to_inds(x_dim, vec_dim)
        rows = jnp.asarray(np.asarray(inds[0], dtype=np.int32))
        cols = jnp.asarray(np.asarray(inds[1], dtype=np.int32))
        lbda = jnp.concatenate([jnp.exp(sv[:x_dim]), sv[x_dim:]])
        tril_const = jnp.zeros((D, D), jnp.float32).at[rows, cols].set(lbda)

    # loc is the identity mean -> return x directly (no kernel copy, no HBM traffic).
    loc = x

    dd = D * D
    out_bytes = B * dd * 4

    # ---- Tiny-output fast path: XLA's broadcast is already at the write roofline and
    # has no custom-call/grid overhead.
    if out_bytes < min_pallas_bytes:
        return loc, jnp.broadcast_to(tril_const[None, :, :], (B, D, D))

    flat_const = tril_const.reshape(dd)

    # ---- Lane-dense output layout: pack `group` batch rows per 128-aligned output row.
    # Always pad the batch up to a multiple of `group` so we never fall back to a
    # narrow last dim (masked vst); extra writes are at most (group-1) tiny rows.
    group = math.lcm(dd, 128) // dd
    n_rows = -(-B // group)                 # ceil(B / group)
    row_width = group * dd                  # multiple of 128 -> full-vreg stores
    const_row = jnp.tile(flat_const, group).reshape(1, row_width)

    vmem_cap = _tpu_vmem_capacity_bytes()
    target_block = 8 << 20                  # ~8 MiB blocks amortize the ~0.35us/step cost
    tb = _choose_batch_tile(n_rows, row_width * 4, target_block)
    grid = (pl.cdiv(n_rows, tb),)

    # Explicit VMEM budget: up to 4 output buffers + input row + slack, clamped to
    # 3/4 of physical VMEM (tightest on v7x's 64 MiB; raises v5e's 16 MiB scoped default).
    block_bytes = tb * row_width * 4
    vmem_limit = 4 * block_bytes + 2 * row_width * 4 + (4 << 20)
    vmem_limit = int(min(max(vmem_limit, 32 << 20), (vmem_cap * 3) // 4))

    cost = pl.CostEstimate(flops=0, transcendentals=0,
                           bytes_accessed=n_rows * row_width * 4 + row_width * 4)

    def call(buffers):
        if buffers is None:
            out_spec = pl.BlockSpec((tb, row_width), lambda i: (i, 0))
        else:
            out_spec = pl.BlockSpec((tb, row_width), lambda i: (i, 0),
                                    pipeline_mode=pl.Buffered(buffers))
        return pl.pallas_call(
            _broadcast_tril_kernel,
            out_shape=jax.ShapeDtypeStruct((n_rows, row_width), jnp.float32),
            grid=grid,
            in_specs=[pl.BlockSpec((1, row_width), lambda i: (0, 0))],
            out_specs=out_spec,
            compiler_params=pltpu.CompilerParams(
                dimension_semantics=("parallel",),
                vmem_limit_bytes=vmem_limit),
            cost_estimate=cost,
        )(const_row)

    try:
        # Deeper output buffering keeps more HBM writebacks in flight (kernel is
        # pure write-DMA bound; most valuable on v7x's short per-block DMAs).
        tril_2d = call(3)
    except Exception:
        tril_2d = call(None)   # default double-buffering fallback

    # Contiguous reshape back to the batched lower-triangular factor; drop padding.
    scale_tril = tril_2d.reshape(n_rows * group, D, D)[:B]
    return loc, scale_tril
    # TODO(synk): the MultivariateNormal distribution object itself (log_prob /
    # sampling machinery) has no tensor compute in forward and is not built here.


def _reference(x, scale_vec, x_dim, vec_dim):
    """Pure-numpy reference mirroring the PyTorch semantics."""
    x = np.asarray(x, dtype=np.float32)
    sv = np.asarray(scale_vec, dtype=np.float32)
    B, D = x.shape
    loc = x.copy()
    if vec_dim == x_dim + 1:
        tril = np.broadcast_to(np.exp(sv[0]) * np.eye(D, dtype=np.float32),
                               (B, D, D)).copy()
    else:
        lbda = np.concatenate([np.exp(sv[:x_dim]), sv[x_dim:]])
        inds = vec_to_inds(x_dim, vec_dim)
        tril = np.zeros((B, D, D), dtype=np.float32)
        tril[:, inds[0], inds[1]] = lbda[None, :]
    return loc, tril


if __name__ == "__main__":
    key = jax.random.PRNGKey(0)

    def run_case(B, x_dim, vec_dim, case_key, min_pallas_bytes):
        kx, ks = jax.random.split(case_key)
        x = jax.random.normal(kx, (B, x_dim), dtype=jnp.float32)
        L = vec_dim - x_dim
        scale_vec = 0.1 * jax.random.normal(ks, (L,), dtype=jnp.float32)
        loc, tril = id_mu_cst_lambda_forward(x, scale_vec, x_dim, vec_dim,
                                             min_pallas_bytes=min_pallas_bytes)
        loc, tril = jax.block_until_ready((loc, tril))
        ref_loc, ref_tril = _reference(np.asarray(x), np.asarray(scale_vec),
                                       x_dim, vec_dim)
        np.testing.assert_allclose(np.asarray(loc), ref_loc, rtol=1e-6, atol=1e-6)
        np.testing.assert_allclose(np.asarray(tril), ref_tril, rtol=1e-6, atol=1e-6)

    x_dim = 4
    full_vec_dim = x_dim + (x_dim * (x_dim + 1)) // 2   # 4 + 10 = 14

    k1, k2, k3, k4, k5 = jax.random.split(key, 5)
    run_case(2,   x_dim, full_vec_dim, k1, 1 << 20)   # tiny output -> wrapper fast path
    run_case(2,   x_dim, x_dim + 1,    k2, 1 << 20)   # isotropic branch, fast path
    run_case(16,  x_dim, full_vec_dim, k3, 0)         # Pallas path, exact group multiple
    run_case(10,  x_dim, full_vec_dim, k4, 0)         # Pallas path, batch padded to group
    run_case(400, x_dim, full_vec_dim, k5, 0)         # Pallas path, multi-block grid

    print("KERNEL_OK")
</pallas_src>

<mosaic_0001>
module attributes {stable_mosaic.version = 11 : i64} {
  func.func @_broadcast_tril_kernel(%arg0: i32, %arg1: memref<1x128xf32, #tpu.memory_space<vmem>>, %arg2: memref<2x128xf32, #tpu.memory_space<vmem>>) attributes {dimension_semantics = [#tpu.dimension_semantics<parallel>], iteration_bounds = array<i64: 1>, scalar_prefetch = 0 : i64, scratch_operands = 0 : i64, tpu.core_type = #tpu.core_type<tc>, window_params = [{pipeline_mode = #tpu.pipeline_mode<synchronous>, transform_indices = @transform_0, window_bounds = array<i64: 1, 128>}, {transform_indices = @transform_1, window_bounds = array<i64: 2, 128>}]} {
    %c0 = arith.constant 0 : index
    %c0_0 = arith.constant 0 : index
    %0 = vector.load %arg1[%c0, %c0_0] : memref<1x128xf32, #tpu.memory_space<vmem>>, vector<1x128xf32>
    %1 = vector.shape_cast %0 : vector<1x128xf32> to vector<1x128xf32>
    %2 = vector.broadcast %1 : vector<1x128xf32> to vector<2x128xf32>
    %c0_1 = arith.constant 0 : index
    %c0_2 = arith.constant 0 : index
    %3 = vector.load %arg2[%c0_1, %c0_2] : memref<2x128xf32, #tpu.memory_space<vmem>>, vector<2x128xf32>
    tpu.vector_store %arg2[%c0_1, %c0_2], %2 {strides = array<i32>} : memref<2x128xf32, #tpu.memory_space<vmem>>, vector<2x128xf32>,
    return
  }
  func.func @transform_0(%arg0: i32) -> (i32, i32) {
    %c0_i32 = arith.constant 0 : i32
    %c0_i32_0 = arith.constant 0 : i32
    %c0_i32_1 = arith.constant 0 : i32
    return %c0_i32, %c0_i32_0 : i32, i32
  }
  func.func @transform_1(%arg0: i32) -> (i32, i32) {
    %c0_i32 = arith.constant 0 : i32
    %c0_i32_0 = arith.constant 0 : i32
    return %arg0, %c0_i32 : i32, i32
  }
}

</mosaic_0001>

<bundles_post_ra>
// kernel: tpu_custom_call.1
= control target key start
LH: loop header
LB: loop body
LE: loop exit
PB: predicated region body
PF: predicated region fallthrough
CT: control target
= control target key end

     0   :  { %6 = vsyncpa [#allocation3], 0  ;;  %s109_s0 = inlined_call_operand.hbm [shape: f32[1,128], index: 0, kind: input, shape index: {}]   ;;  %s110_s1 = inlined_call_operand.hbm [shape: f32[2,128], index: 1, kind: output, shape index: {}]  }
   0x1   :  { %7 = vsyncpa [#allocation4], 0  ;;  %s91_s6 = smov [#allocation2]  }
   0x2   :  { %s14_s7 = sshll.u32 %s91_s6, 4  ;;  %s15_s7 = int_to_ptr.vmem [resolvable:$true] %s14_s7 }
   0x3   :  { %s55_s8 = scalar_lea.vmem %s15_s7, 16  ;;  %s59_s9 = scalar_lea.vmem %s15_s7, 32 }
   0x4   :  { %p56_p0 = scmp.ne.s32.totalorder %s15_s7, %s55_s8  ;;  %p60_p1 = scmp.lt.s32.totalorder %s15_s7, %s15_s7 }
   0x5   :  { %p61_p2 = scmp.lt.s32.totalorder %s59_s9, %s55_s8 }
   0x7   :  { %p62_p3 = por %p61_p2, %p60_p1 }
   0x9   :  { %p63_p4 = pnand %p62_p3, %p56_p0 }
   0xb   :  { %66 = shalt.err (!%p63_p4)
}
   0xc   :  { %17 = dma.hbm_to_vmem [thread:$0]  %s109_s0, 16, %s15_s7, [#allocation3]  }
   0xd   :  { %87 = dma.done.wait [#allocation3], 16  }
   0xe   :  { %88 = vsyncadd [#allocation3], 4294967280  ;;  %s92_s12 = smov [#allocation5]   ;;  %v44_v0 = vld [vmem:[#allocation2] ss:$0 sm:$0xff] }
   0xf   :  { %s35_s13 = sshll.u32 %s92_s12, 4  ;;  %28 = vst [vmem:[#allocation5] sm:$0x3] %v44_v0  ;;  %s36_s13 = int_to_ptr.vmem [resolvable:$true] %s35_s13 }
  0x10   :  { %s67_s14 = scalar_lea.vmem %s36_s13, 32  ;;  %p72_p6 = scmp.lt.s32.totalorder %s36_s13, %s36_s13 }
  0x11   :  { %p68_p5 = scmp.ne.s32.totalorder %s36_s13, %s67_s14  ;;  %p73_p7 = scmp.lt.s32.totalorder %s67_s14, %s67_s14 }
  0x13   :  { %p74_p8 = por %p73_p7, %p72_p6 }
  0x15   :  { %p75_p9 = pnand %p74_p8, %p68_p5 }
  0x17   :  { %78 = shalt.err (!%p75_p9)
}
  0x18   :  { %38 = dma.vmem_to_hbm [thread:$0]  %s36_s13, 32, %s110_s1, [#allocation4]  }
  0x19   :  { %89 = dma.done.wait [#allocation4], 32  }
  0x1a   :  { %90 = vsyncadd [#allocation4], 4294967264 }
  0x1b   :  { %42 = vsyncpa [#allocation3], 1 }
  0x1c   :  { %43 = vsyncpa [#allocation4], 1 }

</bundles_post_ra>
